<compile_context>
chip_gen: v7x
topology: tpu7x:2x2x1
jax: 0.10.0
libtpu: 0.0.40
codegen_flags: <defaults>
</compile_context>

<pallas_src>
import jax
import jax.numpy as jnp
from jax.experimental import pallas as pl
from jax.experimental.pallas import tpu as pltpu

PACK = 32                  # samples packed per 128-lane row (4 features each)
IN_F = 4
HID_F = 8
LANES_IN = PACK * IN_F     # 128
LANES_HID = PACK * HID_F   # 256


def _round_up(a, m):
    return ((a + m - 1) // m) * m


def seq_container_kernel(x_ref, w1_ref, b1_ref, w21_ref, b21_ref,
                         w2_ref, b2_ref, o_ref):
    """One lane-dense batch tile; fused shared-weight chain (4 bf16 matmuls)."""
    x = x_ref[...].astype(jnp.bfloat16)                      # (tr, 128)

    # Block 1: Linear(4,8) + ReLU6 on packed lanes (single-pass bf16 MXU, f32 acc).
    h = jnp.dot(x, w1_ref[...], preferred_element_type=jnp.float32)
    h = jnp.clip(h + b1_ref[...], 0.0, 6.0)                  # f32 VPU (v5e-safe)

    # Blocks 2 & 3 fused through the shared weights:
    #   clip(((h@W2 + b2)@W1) + b1) == clip(h@(W2@W1) + (b2@W1 + b1))
    w21 = w21_ref[...]
    b21 = b21_ref[...]                                       # (1, 256): sublane bcast
    h = jnp.clip(
        jnp.dot(h.astype(jnp.bfloat16), w21, preferred_element_type=jnp.float32)
        + b21, 0.0, 6.0)
    h = jnp.clip(
        jnp.dot(h.astype(jnp.bfloat16), w21, preferred_element_type=jnp.float32)
        + b21, 0.0, 6.0)

    # Final Linear(8,4).
    out = jnp.dot(h.astype(jnp.bfloat16), w2_ref[...],
                  preferred_element_type=jnp.float32) + b2_ref[...]
    o_ref[...] = out.astype(o_ref.dtype)


def prepare_params(w1, b1, w2, b2):
    """Once-per-weight-change prep: algebraic fusion + block-diagonal packing.

    w1: (4, 8), b1: (1, 8), w2: (8, 4), b2: (1, 4)  (transposed vs PyTorch so
    the kernel computes x @ W).  Returns bf16 block-diagonal weights + f32 biases.
    """
    w21 = w2 @ w1                       # (8, 8)
    b21 = b2 @ w1 + b1                  # (1, 8)
    eye = jnp.eye(PACK, dtype=jnp.float32)
    w1_bd = jnp.kron(eye, w1).astype(jnp.bfloat16)     # (128, 256)
    w21_bd = jnp.kron(eye, w21).astype(jnp.bfloat16)   # (256, 256)
    w2_bd = jnp.kron(eye, w2).astype(jnp.bfloat16)     # (256, 128)
    b1_bd = jnp.tile(b1, (1, PACK)).astype(jnp.float32)    # (1, 256)
    b21_bd = jnp.tile(b21, (1, PACK)).astype(jnp.float32)  # (1, 256)
    b2_bd = jnp.tile(b2, (1, PACK)).astype(jnp.float32)    # (1, 128)
    return w1_bd, b1_bd, w21_bd, b21_bd, w2_bd, b2_bd


def seq_container_forward(x, packed_params, *, tile_rows=4096):
    """x: (B, 4) f32.  packed_params: output of prepare_params()."""
    w1_bd, b1_bd, w21_bd, b21_bd, w2_bd, b2_bd = packed_params
    B = x.shape[0]
    dt = x.dtype

    # --- batch tiling (packed rows of 32 samples each) -----------------------
    rows = pl.cdiv(B, PACK)
    tile_rows = max(8, _round_up(tile_rows, 8))              # sublane multiple of 8
    tr = min(tile_rows, _round_up(rows, 8))
    # v7x megacore: prefer >= 2 grid steps so the "parallel" batch axis is
    # sharded across both TensorCores (free on v5e/v6e: just one more loop step).
    if _round_up(rows, 8) > 8 and _round_up(rows, tr) // tr < 2:
        tr = max(8, _round_up((rows + 1) // 2, 8))
    rows_pad = _round_up(rows, tr)
    b_pad = rows_pad * PACK

    # --- pack the batch; avoid wrapper-side copies when already aligned ------
    if b_pad == B:
        x_p = x.reshape(rows_pad, LANES_IN)                  # free row-major view
    else:
        # TODO(synk): handle the ragged tail tile in-kernel with a masked store
        # to avoid this pad copy for large unaligned batches.
        x_p = jnp.pad(x, ((0, b_pad - B), (0, 0))).reshape(rows_pad, LANES_IN)

    out_p = pl.pallas_call(
        seq_container_kernel,
        out_shape=jax.ShapeDtypeStruct((rows_pad, LANES_IN), dt),
        grid=(rows_pad // tr,),
        in_specs=[
            pl.BlockSpec((tr, LANES_IN), lambda i: (i, 0)),           # x tile
            pl.BlockSpec((LANES_IN, LANES_HID), lambda i: (0, 0)),    # W1  (bd, bf16)
            pl.BlockSpec((1, LANES_HID), lambda i: (0, 0)),           # b1  (bd, f32)
            pl.BlockSpec((LANES_HID, LANES_HID), lambda i: (0, 0)),   # W21 (bd, bf16)
            pl.BlockSpec((1, LANES_HID), lambda i: (0, 0)),           # b21 (bd, f32)
            pl.BlockSpec((LANES_HID, LANES_IN), lambda i: (0, 0)),    # W2  (bd, bf16)
            pl.BlockSpec((1, LANES_IN), lambda i: (0, 0)),            # b2  (bd, f32)
        ],
        out_specs=pl.BlockSpec((tr, LANES_IN), lambda i: (i, 0)),
        compiler_params=pltpu.CompilerParams(
            dimension_semantics=("parallel",),        # shard batch across TCs (v7x)
            vmem_limit_bytes=32 * 1024 * 1024),       # headroom above v5e's 16 MiB
    )(x_p, w1_bd, b1_bd, w21_bd, b21_bd, w2_bd, b2_bd)

    out = out_p.reshape(b_pad, IN_F)                          # free view
    return out if b_pad == B else out[:B]


def init_params(key):
    """Deterministic init mirroring nn.Linear default (uniform +/- 1/sqrt(fan_in))."""
    k1, k2, k3, k4 = jax.random.split(key, 4)
    bound1 = 1.0 / jnp.sqrt(4.0)   # Linear(4, 8)
    bound2 = 1.0 / jnp.sqrt(8.0)   # Linear(8, 4)
    w1 = jax.random.uniform(k1, (4, 8), jnp.float32, -bound1, bound1)
    b1 = jax.random.uniform(k2, (1, 8), jnp.float32, -bound1, bound1)
    w2 = jax.random.uniform(k3, (8, 4), jnp.float32, -bound2, bound2)
    b2 = jax.random.uniform(k4, (1, 4), jnp.float32, -bound2, bound2)
    return w1, b1, w2, b2


def reference_forward(x, w1, b1, w2, b2):
    """Pure-JAX f32 reference of the PyTorch forward (unfused)."""
    for _ in range(3):
        h = jnp.clip(x @ w1 + b1, 0.0, 6.0)
        x = h @ w2 + b2
    return x


if __name__ == "__main__":
    key = jax.random.PRNGKey(0)
    kx, kp = jax.random.split(key)

    batch = 8
    x = jax.random.normal(kx, (batch, 4), jnp.float32)
    w1, b1, w2, b2 = init_params(kp)

    packed = prepare_params(w1, b1, w2, b2)        # hoisted once per weight change
    out = seq_container_forward(x, packed)
    out = jax.block_until_ready(out)

    ref = reference_forward(x, w1, b1, w2, b2)
    assert out.shape == (batch, 4)
    # bf16 single-pass matmuls (pinned precision) vs f32 reference => loosened tol.
    assert jnp.allclose(out, ref, atol=5e-2, rtol=5e-2), (
        f"max abs err {jnp.max(jnp.abs(out - ref))}")

    print("KERNEL_OK")
</pallas_src>

<mosaic_0001>
module attributes {stable_mosaic.version = 11 : i64} {
  func.func @seq_container_kernel(%arg0: i32, %arg1: memref<8x128xf32, #tpu.memory_space<vmem>>, %arg2: memref<128x256xbf16, #tpu.memory_space<vmem>>, %arg3: memref<1x256xf32, #tpu.memory_space<vmem>>, %arg4: memref<256x256xbf16, #tpu.memory_space<vmem>>, %arg5: memref<1x256xf32, #tpu.memory_space<vmem>>, %arg6: memref<256x128xbf16, #tpu.memory_space<vmem>>, %arg7: memref<1x128xf32, #tpu.memory_space<vmem>>, %arg8: memref<8x128xf32, #tpu.memory_space<vmem>>) attributes {dimension_semantics = [#tpu.dimension_semantics<parallel>], iteration_bounds = array<i64: 1>, scalar_prefetch = 0 : i64, scratch_operands = 0 : i64, tpu.core_type = #tpu.core_type<tc>, window_params = [{transform_indices = @transform_0, window_bounds = array<i64: 8, 128>}, {pipeline_mode = #tpu.pipeline_mode<synchronous>, transform_indices = @transform_1, window_bounds = array<i64: 128, 256>}, {pipeline_mode = #tpu.pipeline_mode<synchronous>, transform_indices = @transform_2, window_bounds = array<i64: 1, 256>}, {pipeline_mode = #tpu.pipeline_mode<synchronous>, transform_indices = @transform_3, window_bounds = array<i64: 256, 256>}, {pipeline_mode = #tpu.pipeline_mode<synchronous>, transform_indices = @transform_4, window_bounds = array<i64: 1, 256>}, {pipeline_mode = #tpu.pipeline_mode<synchronous>, transform_indices = @transform_5, window_bounds = array<i64: 256, 128>}, {pipeline_mode = #tpu.pipeline_mode<synchronous>, transform_indices = @transform_6, window_bounds = array<i64: 1, 128>}, {transform_indices = @transform_7, window_bounds = array<i64: 8, 128>}]} {
    %c0 = arith.constant 0 : index
    %c0_0 = arith.constant 0 : index
    %0 = vector.load %arg1[%c0, %c0_0] : memref<8x128xf32, #tpu.memory_space<vmem>>, vector<8x128xf32>
    %1 = arith.truncf %0 : vector<8x128xf32> to vector<8x128xbf16>
    %c0_1 = arith.constant 0 : index
    %c0_2 = arith.constant 0 : index
    %2 = vector.load %arg2[%c0_1, %c0_2] : memref<128x256xbf16, #tpu.memory_space<vmem>>, vector<128x256xbf16>
    %cst = arith.constant dense<0.000000e+00> : vector<8x256xf32>
    %3 = tpu.matmul %1, %2, %cst {dimension_numbers = #tpu.dot_dimension_numbers<[1], [0], [0], [1], [0, 0, 1, 1], [], []>} : vector<8x128xbf16>, vector<128x256xbf16>, vector<8x256xf32> -> vector<8x256xf32>
    %c0_3 = arith.constant 0 : index
    %c0_4 = arith.constant 0 : index
    %4 = vector.load %arg3[%c0_3, %c0_4] : memref<1x256xf32, #tpu.memory_space<vmem>>, vector<1x256xf32>
    %5 = vector.broadcast %4 : vector<1x256xf32> to vector<8x256xf32>
    %6 = arith.addf %3, %5 : vector<8x256xf32>
    %cst_5 = arith.constant 0.000000e+00 : f32
    %cst_6 = arith.constant 6.000000e+00 : f32
    %7 = vector.broadcast %cst_5 : f32 to vector<8x256xf32>
    %8 = arith.maximumf %7, %6 : vector<8x256xf32>
    %9 = vector.broadcast %cst_6 : f32 to vector<8x256xf32>
    %10 = arith.minimumf %9, %8 : vector<8x256xf32>
    %c0_7 = arith.constant 0 : index
    %c0_8 = arith.constant 0 : index
    %11 = vector.load %arg4[%c0_7, %c0_8] : memref<256x256xbf16, #tpu.memory_space<vmem>>, vector<256x256xbf16>
    %c0_9 = arith.constant 0 : index
    %c0_10 = arith.constant 0 : index
    %12 = vector.load %arg5[%c0_9, %c0_10] : memref<1x256xf32, #tpu.memory_space<vmem>>, vector<1x256xf32>
    %13 = arith.truncf %10 : vector<8x256xf32> to vector<8x256xbf16>
    %cst_11 = arith.constant dense<0.000000e+00> : vector<8x256xf32>
    %14 = tpu.matmul %13, %11, %cst_11 {dimension_numbers = #tpu.dot_dimension_numbers<[1], [0], [0], [1], [0, 0, 1, 1], [], []>} : vector<8x256xbf16>, vector<256x256xbf16>, vector<8x256xf32> -> vector<8x256xf32>
    %15 = vector.broadcast %12 : vector<1x256xf32> to vector<8x256xf32>
    %16 = arith.addf %14, %15 : vector<8x256xf32>
    %cst_12 = arith.constant 0.000000e+00 : f32
    %cst_13 = arith.constant 6.000000e+00 : f32
    %17 = vector.broadcast %cst_12 : f32 to vector<8x256xf32>
    %18 = arith.maximumf %17, %16 : vector<8x256xf32>
    %19 = vector.broadcast %cst_13 : f32 to vector<8x256xf32>
    %20 = arith.minimumf %19, %18 : vector<8x256xf32>
    %21 = arith.truncf %20 : vector<8x256xf32> to vector<8x256xbf16>
    %cst_14 = arith.constant dense<0.000000e+00> : vector<8x256xf32>
    %22 = tpu.matmul %21, %11, %cst_14 {dimension_numbers = #tpu.dot_dimension_numbers<[1], [0], [0], [1], [0, 0, 1, 1], [], []>} : vector<8x256xbf16>, vector<256x256xbf16>, vector<8x256xf32> -> vector<8x256xf32>
    %23 = vector.broadcast %12 : vector<1x256xf32> to vector<8x256xf32>
    %24 = arith.addf %22, %23 : vector<8x256xf32>
    %cst_15 = arith.constant 0.000000e+00 : f32
    %cst_16 = arith.constant 6.000000e+00 : f32
    %25 = vector.broadcast %cst_15 : f32 to vector<8x256xf32>
    %26 = arith.maximumf %25, %24 : vector<8x256xf32>
    %27 = vector.broadcast %cst_16 : f32 to vector<8x256xf32>
    %28 = arith.minimumf %27, %26 : vector<8x256xf32>
    %29 = arith.truncf %28 : vector<8x256xf32> to vector<8x256xbf16>
    %c0_17 = arith.constant 0 : index
    %c0_18 = arith.constant 0 : index
    %30 = vector.load %arg6[%c0_17, %c0_18] : memref<256x128xbf16, #tpu.memory_space<vmem>>, vector<256x128xbf16>
    %cst_19 = arith.constant dense<0.000000e+00> : vector<8x128xf32>
    %31 = tpu.matmul %29, %30, %cst_19 {dimension_numbers = #tpu.dot_dimension_numbers<[1], [0], [0], [1], [0, 0, 1, 1], [], []>} : vector<8x256xbf16>, vector<256x128xbf16>, vector<8x128xf32> -> vector<8x128xf32>
    %c0_20 = arith.constant 0 : index
    %c0_21 = arith.constant 0 : index
    %32 = vector.load %arg7[%c0_20, %c0_21] : memref<1x128xf32, #tpu.memory_space<vmem>>, vector<1x128xf32>
    %33 = vector.broadcast %32 : vector<1x128xf32> to vector<8x128xf32>
    %34 = arith.addf %31, %33 : vector<8x128xf32>
    %c0_22 = arith.constant 0 : index
    %c0_23 = arith.constant 0 : index
    %35 = vector.load %arg8[%c0_22, %c0_23] : memref<8x128xf32, #tpu.memory_space<vmem>>, vector<8x128xf32>
    tpu.vector_store %arg8[%c0_22, %c0_23], %34 {strides = array<i32>} : memref<8x128xf32, #tpu.memory_space<vmem>>, vector<8x128xf32>,
    return
  }
  func.func @transform_0(%arg0: i32) -> (i32, i32) {
    %c0_i32 = arith.constant 0 : i32
    %c0_i32_0 = arith.constant 0 : i32
    return %arg0, %c0_i32 : i32, i32
  }
  func.func @transform_1(%arg0: i32) -> (i32, i32) {
    %c0_i32 = arith.constant 0 : i32
    %c0_i32_0 = arith.constant 0 : i32
    %c0_i32_1 = arith.constant 0 : i32
    return %c0_i32, %c0_i32_0 : i32, i32
  }
  func.func @transform_2(%arg0: i32) -> (i32, i32) {
    %c0_i32 = arith.constant 0 : i32
    %c0_i32_0 = arith.constant 0 : i32
    %c0_i32_1 = arith.constant 0 : i32
    return %c0_i32, %c0_i32_0 : i32, i32
  }
  func.func @transform_3(%arg0: i32) -> (i32, i32) {
    %c0_i32 = arith.constant 0 : i32
    %c0_i32_0 = arith.constant 0 : i32
    %c0_i32_1 = arith.constant 0 : i32
    return %c0_i32, %c0_i32_0 : i32, i32
  }
  func.func @transform_4(%arg0: i32) -> (i32, i32) {
    %c0_i32 = arith.constant 0 : i32
    %c0_i32_0 = arith.constant 0 : i32
    %c0_i32_1 = arith.constant 0 : i32
    return %c0_i32, %c0_i32_0 : i32, i32
  }
  func.func @transform_5(%arg0: i32) -> (i32, i32) {
    %c0_i32 = arith.constant 0 : i32
    %c0_i32_0 = arith.constant 0 : i32
    %c0_i32_1 = arith.constant 0 : i32
    return %c0_i32, %c0_i32_0 : i32, i32
  }
  func.func @transform_6(%arg0: i32) -> (i32, i32) {
    %c0_i32 = arith.constant 0 : i32
    %c0_i32_0 = arith.constant 0 : i32
    %c0_i32_1 = arith.constant 0 : i32
    return %c0_i32, %c0_i32_0 : i32, i32
  }
  func.func @transform_7(%arg0: i32) -> (i32, i32) {
    %c0_i32 = arith.constant 0 : i32
    %c0_i32_0 = arith.constant 0 : i32
    return %arg0, %c0_i32 : i32, i32
  }
}

</mosaic_0001>

<bundles_post_ra>
// kernel: tpu_custom_call.1
= control target key start
LH: loop header
LB: loop body
LE: loop exit
PB: predicated region body
PF: predicated region fallthrough
CT: control target
= control target key end

     0   :  { %12 = vsyncpa [#allocation3], 0  ;;  %s1157_s0 = inlined_call_operand.hbm [shape: f32[8,128], index: 0, kind: input, shape index: {}]   ;;  %s1158_s1 = inlined_call_operand.hbm [shape: bf16[128,256], index: 1, kind: input, shape index: {}]   ;;  %s1159_s2 = inlined_call_operand.vmem [shape: f32[1,256], index: 2, kind: input, shape index: {}]   ;;  %s1160_s3 = inlined_call_operand.hbm [shape: bf16[256,256], index: 3, kind: input, shape index: {}]   ;;  %s1161_s4 = inlined_call_operand.vmem [shape: f32[1,256], index: 4, kind: input, shape index: {}]   ;;  %s1162_s5 = inlined_call_operand.hbm [shape: bf16[256,128], index: 5, kind: input, shape index: {}]   ;;  %s1163_s6 = inlined_call_operand.vmem [shape: f32[1,128], index: 6, kind: input, shape index: {}]   ;;  %s1164_s7 = inlined_call_operand.hbm [shape: f32[8,128], index: 7, kind: output, shape index: {}]  }
   0x1   :  { %13 = vsyncpa [#allocation6], 0 }
   0x2   :  { %14 = vsyncpa [#allocation9], 0 }
   0x3   :  { %15 = vsyncpa [#allocation4], 0  ;;  %s1032_s24 = smov [#allocation5]   ;;  %s914_s28 = scalar_lea.hbm %s1158_s1, 2048 }
   0x4   :  { %s31_s25 = sshll.u32 %s1032_s24, 4  ;;  %p915_p0 = scmp.ne.s32.totalorder %s1158_s1, %s914_s28  ;;  %s32_s25 = int_to_ptr.vmem [resolvable:$true] %s31_s25 }
   0x5   :  { %p918_p1 = scmp.lt.u32.totalorder %s914_s28, %s1158_s1 }
   0x7   :  { %p920_p2 = pnand %p918_p1, %p915_p0 }
   0x9   :  { %923 = shalt.err (!%p920_p2)
}
   0xa   :  { %s924_s10 = scalar_lea.vmem %s32_s25, 2048  ;;  %p929_p4 = scmp.lt.s32.totalorder %s32_s25, %s32_s25 }
   0xb   :  { %p925_p3 = scmp.ne.s32.totalorder %s32_s25, %s924_s10  ;;  %p930_p5 = scmp.lt.s32.totalorder %s924_s10, %s924_s10 }
   0xd   :  { %p931_p6 = por %p930_p5, %p929_p4 }
   0xf   :  { %p932_p7 = pnand %p931_p6, %p925_p3 }
  0x11   :  { %935 = shalt.err (!%p932_p7)
}
  0x12   :  { %s1033_s11 = smov 128   ;;  %s1034_s12 = smov 8  }
  0x13   :  { %37 = dma.hbm_to_vmem [thread:$0]  %s1158_s1, 2048, %s32_s25, [#allocation6], %s1033_s11, %s1033_s11, %s1034_s12  }
  0x14   :  { %s1035_s15 = smov [#allocation2]   ;;  %s1036_s17 = smov [#allocation7]  }
  0x15   :  { %s22_s16 = sshll.u32 %s1035_s15, 4  ;;  %s45_s18 = sshll.u32 %s1036_s17, 4  ;;  %s23_s16 = int_to_ptr.vmem [resolvable:$true] %s22_s16  ;;  %s46_s18 = int_to_ptr.vmem [resolvable:$true] %s45_s18 }
  0x16   :  { %s936_s21 = scalar_lea.hbm %s1157_s0, 128 }
  0x17   :  { %p937_p8 = scmp.ne.s32.totalorder %s1157_s0, %s936_s21  ;;  %p940_p9 = scmp.lt.u32.totalorder %s936_s21, %s1157_s0 }
  0x19   :  { %p942_p10 = pnand %p940_p9, %p937_p8 }
  0x1b   :  { %945 = shalt.err (!%p942_p10)
}
  0x1c   :  { %s946_s1 = scalar_lea.vmem %s23_s16, 128  ;;  %p951_p12 = scmp.lt.s32.totalorder %s23_s16, %s23_s16 }
  0x1d   :  { %p947_p11 = scmp.ne.s32.totalorder %s23_s16, %s946_s1  ;;  %p952_p13 = scmp.lt.s32.totalorder %s946_s1, %s946_s1 }
  0x1f   :  { %p953_p0 = por %p952_p13, %p951_p12 }
  0x21   :  { %p954_p1 = pnand %p953_p0, %p947_p11 }
  0x23   :  { %957 = shalt.err (!%p954_p1)
}
  0x24   :  { %25 = dma.hbm_to_vmem [thread:$0]  %s1157_s0, 128, %s23_s16, [#allocation3]  }
  0x25   :  { %s958_s30 = scalar_lea.hbm %s1160_s3, 4096 }
  0x26   :  { %p959_p2 = scmp.ne.s32.totalorder %s1160_s3, %s958_s30  ;;  %p962_p3 = scmp.lt.u32.totalorder %s958_s30, %s1160_s3 }
  0x28   :  { %p964_p4 = pnand %p962_p3, %p959_p2 }
  0x2a   :  { %967 = shalt.err (!%p964_p4)
}
  0x2b   :  { %s968_s14 = scalar_lea.vmem %s46_s18, 4096  ;;  %p973_p6 = scmp.lt.s32.totalorder %s46_s18, %s46_s18 }
  0x2c   :  { %p969_p5 = scmp.ne.s32.totalorder %s46_s18, %s968_s14  ;;  %p974_p7 = scmp.lt.s32.totalorder %s968_s14, %s968_s14 }
  0x2e   :  { %p975_p8 = por %p974_p7, %p973_p6 }
  0x30   :  { %p976_p9 = pnand %p975_p8, %p969_p5 }
  0x32   :  { %979 = shalt.err (!%p976_p9)
}
  0x33   :  { %51 = dma.hbm_to_vmem [thread:$0]  %s1160_s3, 4096, %s46_s18, [#allocation6], %s1033_s11, %s1033_s11, %s1034_s12  }
  0x34   :  { %s1037_s16 = smov [#allocation8]   ;;  %s980_s21 = scalar_lea.hbm %s1162_s5, 2048 }
  0x35   :  { %s59_s17 = sshll.u32 %s1037_s16, 4  ;;  %p981_p10 = scmp.ne.s32.totalorder %s1162_s5, %s980_s21  ;;  %s60_s17 = int_to_ptr.vmem [resolvable:$true] %s59_s17 }
  0x36   :  { %p984_p11 = scmp.lt.u32.totalorder %s980_s21, %s1162_s5 }
  0x38   :  { %p986_p12 = pnand %p984_p11, %p981_p10 }
  0x3a   :  { %989 = shalt.err (!%p986_p12)
}
  0x3b   :  { %s990_s1 = scalar_lea.vmem %s60_s17, 2048  ;;  %p995_p0 = scmp.lt.s32.totalorder %s60_s17, %s60_s17 }
  0x3c   :  { %p991_p13 = scmp.ne.s32.totalorder %s60_s17, %s990_s1  ;;  %p996_p1 = scmp.lt.s32.totalorder %s990_s1, %s990_s1 }
  0x3e   :  { %p997_p2 = por %p996_p1, %p995_p0 }
  0x40   :  { %p998_p3 = pnand %p997_p2, %p991_p13 }
  0x42   :  { %1001 = shalt.err (!%p998_p3)
}
  0x43   :  { %s1038_s3 = smov 64   ;;  %s1039_s11 = smov 4  }
  0x44   :  { %65 = dma.hbm_to_vmem [thread:$0]  %s1162_s5, 2048, %s60_s17, [#allocation9], %s1038_s3, %s1038_s3, %s1039_s11  }
  0x45   :  { %1024 = dma.done.wait [#allocation3], 128  }
  0x46   :  { %1025 = vsyncadd [#allocation3], 4294967168 }
  0x47   :  { %1026 = dma.done.wait [#allocation6], 6144  }
  0x48   :  { %1027 = vsyncadd [#allocation6], 4294961152 }
  0x49   :  { %1028 = dma.done.wait [#allocation9], 2048  }
  0x4a   :  { %1029 = vsyncadd [#allocation9], 4294965248  ;;  %v1040_v0 = vmov 0   ;;  %v826_v1 = vld [vmem:[#allocation5 + $0x4] ss:$8 sps:$4 sm:$0xff]   ;;  %v81_v26 = vld [vmem:[#allocation2] sm:$0xff]  ;;  %v101_v51 = vlaneseq }
  0x4b   :  { %223 = vmatprep.mubr.bf16.mxu0 %v1040_v0  ;;  %v828_v2 = vld [vmem:[#allocation5] ss:$8 sps:$4 sm:$0xff]   ;;  %191 = vmatprep.subr.bf16.mxu0 %v826_v1  ;;  %v829_v3 = vld [vmem:[#allocation5 + $0x14] ss:$8 sps:$4 sm:$0xff]   ;;  %v831_v4 = vld [vmem:[#allocation5 + $0x10] ss:$8 sps:$4 sm:$0xff]   ;;  %v82_v31 = vpack.c.bf16 %v81_v26, %v81_v26 }
  0x4c   :  { %192 = vmatpush1.bf16.msra.mxu0 %v828_v2  ;;  %v832_v5 = vld [vmem:[#allocation5 + $0x24] ss:$8 sps:$4 sm:$0xff]   ;;  %v834_v6 = vld [vmem:[#allocation5 + $0x20] ss:$8 sps:$4 sm:$0xff]   ;;  %v835_v7 = vld [vmem:[#allocation5 + $0x34] ss:$8 sps:$4 sm:$0xff]  }
  0x4d   :  { %193 = vmatprep.subr.bf16.mxu0 %v829_v3  ;;  %v837_v8 = vld [vmem:[#allocation5 + $0x30] ss:$8 sps:$4 sm:$0xff]   ;;  %v838_v9 = vld [vmem:[#allocation5 + $0x44] ss:$8 sps:$4 sm:$0xff]   ;;  %v852_v11 = vld [vmem:[#allocation7] ss:$8 sps:$4 sm:$0xff]  }
  0x4e   :  { %v850_v10 = vld [vmem:[#allocation7 + $0x4] ss:$8 sps:$4 sm:$0xff]   ;;  %v853_v12 = vld [vmem:[#allocation7 + $0x14] ss:$8 sps:$4 sm:$0xff]   ;;  %v840_v13 = vld [vmem:[#allocation5 + $0x40] ss:$8 sps:$4 sm:$0xff]  }
  0x4f   :  { %442 = vmatprep.subr.bf16.mxu1 %v850_v10  ;;  %v855_v14 = vld [vmem:[#allocation7 + $0x10] ss:$8 sps:$4 sm:$0xff]   ;;  %v856_v15 = vld [vmem:[#allocation7 + $0x24] ss:$8 sps:$4 sm:$0xff]   ;;  %v841_v16 = vld [vmem:[#allocation5 + $0x54] ss:$8 sps:$4 sm:$0xff]  }
  0x50   :  { %194 = vmatpush1.bf16.msra.mxu0 %v831_v4  ;;  %443 = vmatpush1.bf16.msra.mxu1 %v852_v11  ;;  %v843_v17 = vld [vmem:[#allocation5 + $0x50] ss:$8 sps:$4 sm:$0xff]   ;;  %v858_v18 = vld [vmem:[#allocation7 + $0x20] ss:$8 sps:$4 sm:$0xff]   ;;  %v859_v19 = vld [vmem:[#allocation7 + $0x34] ss:$8 sps:$4 sm:$0xff]  }
  0x51   :  { %195 = vmatprep.subr.bf16.mxu0 %v832_v5  ;;  %444 = vmatprep.subr.bf16.mxu1 %v853_v12  ;;  %v844_v20 = vld [vmem:[#allocation5 + $0x64] ss:$8 sps:$4 sm:$0xff]   ;;  %v846_v21 = vld [vmem:[#allocation5 + $0x60] ss:$8 sps:$4 sm:$0xff]   ;;  %v861_v22 = vld [vmem:[#allocation7 + $0x30] ss:$8 sps:$4 sm:$0xff]  }
  0x52   :  { %v862_v23 = vld [vmem:[#allocation7 + $0x44] ss:$8 sps:$4 sm:$0xff]   ;;  %v847_v24 = vld [vmem:[#allocation5 + $0x74] ss:$8 sps:$4 sm:$0xff]   ;;  %v849_v25 = vld [vmem:[#allocation5 + $0x70] ss:$8 sps:$4 sm:$0xff]  }
  0x53   :  { %v864_v27 = vld [vmem:[#allocation7 + $0x40] ss:$8 sps:$4 sm:$0xff]   ;;  %v865_v28 = vld [vmem:[#allocation7 + $0x54] ss:$8 sps:$4 sm:$0xff]   ;;  %v867_v29 = vld [vmem:[#allocation7 + $0x50] ss:$8 sps:$4 sm:$0xff]  }
  0x54   :  { %196 = vmatpush1.bf16.msra.mxu0 %v834_v6  ;;  %445 = vmatpush1.bf16.msra.mxu1 %v855_v14  ;;  %v868_v30 = vld [vmem:[#allocation7 + $0x64] ss:$8 sps:$4 sm:$0xff]   ;;  %v870_v32 = vld [vmem:[#allocation7 + $0x60] ss:$8 sps:$4 sm:$0xff]   ;;  %v871_v33 = vld [vmem:[#allocation7 + $0x74] ss:$8 sps:$4 sm:$0xff]  }
  0x55   :  { %197 = vmatprep.subr.bf16.mxu0 %v835_v7  ;;  %446 = vmatprep.subr.bf16.mxu1 %v856_v15  ;;  %v873_v34 = vld [vmem:[#allocation7 + $0x70] ss:$8 sps:$4 sm:$0xff]   ;;  %v874_v35 = vld [vmem:[#allocation7 + $0x84] ss:$8 sps:$4 sm:$0xff]   ;;  %v876_v36 = vld [vmem:[#allocation7 + $0x80] ss:$8 sps:$4 sm:$0xff]  }
  0x56   :  { %v877_v37 = vld [vmem:[#allocation7 + $0x94] ss:$8 sps:$4 sm:$0xff]   ;;  %v879_v38 = vld [vmem:[#allocation7 + $0x90] ss:$8 sps:$4 sm:$0xff]   ;;  %v880_v39 = vld [vmem:[#allocation7 + $0xa4] ss:$8 sps:$4 sm:$0xff]  }
  0x57   :  { %v882_v40 = vld [vmem:[#allocation7 + $0xa0] ss:$8 sps:$4 sm:$0xff]   ;;  %v883_v41 = vld [vmem:[#allocation7 + $0xb4] ss:$8 sps:$4 sm:$0xff]   ;;  %v885_v42 = vld [vmem:[#allocation7 + $0xb0] ss:$8 sps:$4 sm:$0xff]  }
  0x58   :  { %198 = vmatpush1.bf16.msra.mxu0 %v837_v8  ;;  %447 = vmatpush1.bf16.msra.mxu1 %v858_v18  ;;  %v886_v43 = vld [vmem:[#allocation7 + $0xc4] ss:$8 sps:$4 sm:$0xff]   ;;  %v888_v44 = vld [vmem:[#allocation7 + $0xc0] ss:$8 sps:$4 sm:$0xff]   ;;  %v889_v45 = vld [vmem:[#allocation7 + $0xd4] ss:$8 sps:$4 sm:$0xff]  }
  0x59   :  { %199 = vmatprep.subr.bf16.mxu0 %v838_v9  ;;  %448 = vmatprep.subr.bf16.mxu1 %v859_v19  ;;  %v891_v46 = vld [vmem:[#allocation7 + $0xd0] ss:$8 sps:$4 sm:$0xff]   ;;  %v892_v47 = vld [vmem:[#allocation7 + $0xe4] ss:$8 sps:$4 sm:$0xff]   ;;  %v894_v48 = vld [vmem:[#allocation7 + $0xe0] ss:$8 sps:$4 sm:$0xff]  }
  0x5a   :  { %v895_v49 = vld [vmem:[#allocation7 + $0xf4] ss:$8 sps:$4 sm:$0xff]   ;;  %v897_v50 = vld [vmem:[#allocation7 + $0xf0] ss:$8 sps:$4 sm:$0xff]   ;;  %v102_v52 = vshrl.u32 %v101_v51, 7  ;;  %v898_v6 = vld [vmem:[#allocation8 + $0x40] sm:$0xff]  }
  0x5b   :  { %v99_v54 = vld [vmem:[%s1159_s2] sm:$0x3]  ;;  %v899_v7 = vld [vmem:[#allocation8] sm:$0xff]   ;;  %v900_v8 = vld [vmem:[#allocation8 + $0x48] sm:$0xff]   ;;  %s1041_s29 = smov [#allocation10]  }
  0x5c   :  { %200 = vmatpush1.bf16.msra.mxu0 %v840_v13  ;;  %449 = vmatpush1.bf16.msra.mxu1 %v861_v22  ;;  %v103_v53 = vsub.s32 0, %v102_v52  ;;  %v107_v55 = vsub.s32 1, %v102_v52  ;;  %v901_v9 = vld [vmem:[#allocation8 + $0x8] sm:$0xff]   ;;  %v905_v13 = vld [vmem:[#allocation8 + $0x18] sm:$0xff]   ;;  %s718_s30 = sshll.u32 %s1041_s29, 4  ;;  %s719_s30 = int_to_ptr.vmem [resolvable:$true] %s718_s30 }
  0x5d   :  { %201 = vmatprep.subr.bf16.mxu0 %v841_v16  ;;  %450 = vmatprep.subr.bf16.mxu1 %v862_v23  ;;  %v908_v16 = vld [vmem:[#allocation8 + $0x68] sm:$0xff]   ;;  %s1002_s8 = scalar_lea.vmem %s719_s30, 128  ;;  %p1007_p5 = scmp.lt.s32.totalorder %s719_s30, %s719_s30 }
  0x5e   :  { %v104_v56 = vrot.slane %v99_v54, %v103_v53  ;;  %v108_v57 = vrot.slane %v99_v54, %v107_v55  ;;  %p1003_p4 = scmp.ne.s32.totalorder %s719_s30, %s1002_s8  ;;  %p1008_p6 = scmp.lt.s32.totalorder %s1002_s8, %s1002_s8 }
  0x60   :  { %202 = vmatpush1.bf16.msra.mxu0 %v843_v17  ;;  %451 = vmatpush1.bf16.msra.mxu1 %v864_v27  ;;  %v268_v17 = vld [vmem:[%s1161_s4] sm:$0x3]  ;;  %p1009_p7 = por %p1008_p6, %p1007_p5 }
  0x61   :  { %203 = vmatprep.subr.bf16.mxu0 %v844_v20  ;;  %452 = vmatprep.subr.bf16.mxu1 %v865_v28 }
  0x62   :  { %p1010_p8 = pnand %p1009_p7, %p1003_p4 }
  0x64   :  { %204 = vmatpush1.bf16.msra.mxu0 %v846_v21  ;;  %453 = vmatpush1.bf16.msra.mxu1 %v867_v29 }
  0x65   :  { %205 = vmatprep.subr.bf16.mxu0 %v847_v24  ;;  %454 = vmatprep.subr.bf16.mxu1 %v868_v30 }
  0x68   :  { %206 = vmatpush1.bf16.msra.mxu0 %v849_v25  ;;  %455 = vmatpush1.bf16.msra.mxu1 %v870_v32 }
  0x69   :  { %489 = vmatprep.subr.bf16.mxu0 %v850_v10  ;;  %456 = vmatprep.subr.bf16.mxu1 %v871_v33  ;;  %v902_v10 = vld [vmem:[#allocation8 + $0x50] sm:$0xff]  }
  0x6b   :  { %224 = vmatmul.mubr.bf16.vlgmr.msra.gmra.mrb[0].mxu0 %v82_v31 }
  0x6c   :  { %490 = vmatpush1.bf16.msra.mxu0 %v852_v11  ;;  %457 = vmatpush1.bf16.msra.mxu1 %v873_v34  ;;  %v903_v11 = vld [vmem:[#allocation8 + $0x10] sm:$0xff]  }
  0x6d   :  { %491 = vmatprep.subr.bf16.mxu0 %v853_v12  ;;  %458 = vmatprep.subr.bf16.mxu1 %v874_v35  ;;  %v904_v12 = vld [vmem:[#allocation8 + $0x58] sm:$0xff]  }
  0x70   :  { %492 = vmatpush1.bf16.msra.mxu0 %v855_v14  ;;  %459 = vmatpush1.bf16.msra.mxu1 %v876_v36  ;;  %v906_v14 = vld [vmem:[#allocation8 + $0x60] sm:$0xff]  }
  0x71   :  { %493 = vmatprep.subr.bf16.mxu0 %v856_v15  ;;  %460 = vmatprep.subr.bf16.mxu1 %v877_v37  ;;  %v907_v15 = vld [vmem:[#allocation8 + $0x20] sm:$0xff]  }
  0x74   :  { %494 = vmatpush1.bf16.msra.mxu0 %v858_v18  ;;  %461 = vmatpush1.bf16.msra.mxu1 %v879_v38  ;;  %v275_v18 = vrot.slane %v268_v17, %v103_v53 }
  0x75   :  { %495 = vmatprep.subr.bf16.mxu0 %v859_v19  ;;  %462 = vmatprep.subr.bf16.mxu1 %v880_v39  ;;  %v279_v19 = vrot.slane %v268_v17, %v107_v55 }
  0x78   :  { %496 = vmatpush1.bf16.msra.mxu0 %v861_v22  ;;  %463 = vmatpush1.bf16.msra.mxu1 %v882_v40 }
  0x79   :  { %497 = vmatprep.subr.bf16.mxu0 %v862_v23  ;;  %464 = vmatprep.subr.bf16.mxu1 %v883_v41 }
  0x7c   :  { %498 = vmatpush1.bf16.msra.mxu0 %v864_v27  ;;  %465 = vmatpush1.bf16.msra.mxu1 %v885_v42 }
  0x7d   :  { %499 = vmatprep.subr.bf16.mxu0 %v865_v28  ;;  %466 = vmatprep.subr.bf16.mxu1 %v886_v43 }
  0x80   :  { %500 = vmatpush1.bf16.msra.mxu0 %v867_v29  ;;  %467 = vmatpush1.bf16.msra.mxu1 %v888_v44 }
  0x81   :  { %501 = vmatprep.subr.bf16.mxu0 %v868_v30  ;;  %468 = vmatprep.subr.bf16.mxu1 %v889_v45 }
  0x84   :  { %502 = vmatpush1.bf16.msra.mxu0 %v870_v32  ;;  %469 = vmatpush1.bf16.msra.mxu1 %v891_v46  ;;  %v909_v32 = vld [vmem:[#allocation8 + $0x28] sm:$0xff]  }
  0x85   :  { %503 = vmatprep.subr.bf16.mxu0 %v871_v33  ;;  %470 = vmatprep.subr.bf16.mxu1 %v892_v47  ;;  %v910_v33 = vld [vmem:[#allocation8 + $0x70] sm:$0xff]  }
  0x88   :  { %504 = vmatpush1.bf16.msra.mxu0 %v873_v34  ;;  %471 = vmatpush1.bf16.msra.mxu1 %v894_v48  ;;  %v911_v34 = vld [vmem:[#allocation8 + $0x30] sm:$0xff]  }
  0x89   :  { %505 = vmatprep.subr.bf16.mxu0 %v874_v35  ;;  %472 = vmatprep.subr.bf16.mxu1 %v895_v49  ;;  %v912_v35 = vld [vmem:[#allocation8 + $0x78] sm:$0xff]  }
  0x8c   :  { %506 = vmatpush1.bf16.msra.mxu0 %v876_v36  ;;  %473 = vmatpush1.bf16.msra.mxu1 %v897_v50  ;;  %v913_v36 = vld [vmem:[#allocation8 + $0x38] sm:$0xff]  }
  0x8d   :  { %507 = vmatprep.subr.bf16.mxu0 %v877_v37  ;;  %794 = vmatprep.subr.bf16.mxu1 %v898_v6 }
  0x90   :  { %508 = vmatpush1.bf16.msra.mxu0 %v879_v38 }
  0x91   :  { %509 = vmatprep.subr.bf16.mxu0 %v880_v39 }
  0x94   :  { %510 = vmatpush1.bf16.msra.mxu0 %v882_v40 }
  0x95   :  { %511 = vmatprep.subr.bf16.mxu0 %v883_v41 }
  0x98   :  { %512 = vmatpush1.bf16.msra.mxu0 %v885_v42 }
  0x99   :  { %513 = vmatprep.subr.bf16.mxu0 %v886_v43 }
  0x9c   :  { %514 = vmatpush1.bf16.msra.mxu0 %v888_v44 }
  0x9d   :  { %515 = vmatprep.subr.bf16.mxu0 %v889_v45 }
  0xa0   :  { %516 = vmatpush1.bf16.msra.mxu0 %v891_v46 }
  0xa1   :  { %517 = vmatprep.subr.bf16.mxu0 %v892_v47 }
  0xa4   :  { %518 = vmatpush1.bf16.msra.mxu0 %v894_v48 }
  0xa5   :  { %519 = vmatprep.subr.bf16.mxu0 %v895_v49 }
  0xa8   :  { %520 = vmatpush1.bf16.msra.mxu0 %v897_v50  ;;  %v777_v50 = vld [vmem:[%s1163_s6] ss:$0 sm:$0xff] }
 0x13e   :  { %v225_v58 = vpop.f32.mrb[0].mxu0 }
 0x13f   :  { %v226_v59 = vadd.f32 %v225_v58, %v104_v56  ;;  %v227_v60 = vpop.f32.mrb[1].mxu0 }
 0x140   :  { %v228_v61 = vadd.f32 %v227_v60, %v108_v57  ;;  %v229_v62 = vpop.f32.mrb[2].mxu0 }
 0x141   :  { %v232_v63 = vmax.f32 %v226_v59, 0.0  ;;  %v230_v0 = vpop.f32.mrb[3].mxu0 }
 0x142   :  { %v233_v1 = vmax.f32 %v228_v61, 0.0 }
 0x143   :  { %v234_v2 = vmin.f32 %v232_v63, 6.0 }
 0x144   :  { %v235_v3 = vmin.f32 %v233_v1, 6.0 }
 0x145   :  { %v269_v5 = vpack.c.bf16 %v234_v2, %v234_v2 }
 0x146   :  { %v270_v4 = vpack.c.bf16 %v235_v3, %v235_v3 }
 0x148   :  { %474 = vmatprep.mubr.bf16.mxu1 %v270_v4 }
 0x149   :  { %475 = vmatmul.mubr.bf16.vlgmr.msra.gmra.mrb[0].mxu1 %v269_v5 }
 0x14a   :  { %795 = vmatpush3.bf16.msra.mxu1 %v899_v7 }
 0x14b   :  { %796 = vmatprep.subr.bf16.mxu1 %v900_v8 }
 0x14e   :  { %797 = vmatpush3.bf16.msra.mxu1 %v901_v9 }
 0x14f   :  { %798 = vmatprep.subr.bf16.mxu1 %v902_v10 }
 0x152   :  { %799 = vmatpush3.bf16.msra.mxu1 %v903_v11 }
 0x153   :  { %800 = vmatprep.subr.bf16.mxu1 %v904_v12 }
 0x156   :  { %801 = vmatpush3.bf16.msra.mxu1 %v905_v13 }
 0x157   :  { %802 = vmatprep.subr.bf16.mxu1 %v906_v14 }
 0x15a   :  { %803 = vmatpush3.bf16.msra.mxu1 %v907_v15 }
 0x15b   :  { %804 = vmatprep.subr.bf16.mxu1 %v908_v16 }
 0x15e   :  { %805 = vmatpush3.bf16.msra.mxu1 %v909_v32 }
 0x15f   :  { %806 = vmatprep.subr.bf16.mxu1 %v910_v33 }
 0x162   :  { %807 = vmatpush3.bf16.msra.mxu1 %v911_v34 }
 0x163   :  { %808 = vmatprep.subr.bf16.mxu1 %v912_v35 }
 0x166   :  { %809 = vmatpush3.bf16.msra.mxu1 %v913_v36 }
 0x21c   :  { %v476_v20 = vpop.f32.mrb[0].mxu1 }
 0x21d   :  { %v477_v21 = vadd.f32 %v476_v20, %v275_v18  ;;  %v478_v22 = vpop.f32.mrb[1].mxu1 }
 0x21e   :  { %v479_v23 = vadd.f32 %v478_v22, %v279_v19  ;;  %v480_v24 = vpop.f32.mrb[2].mxu1 }
 0x21f   :  { %v483_v25 = vmax.f32 %v477_v21, 0.0  ;;  %v481_v26 = vpop.f32.mrb[3].mxu1 }
 0x220   :  { %v484_v27 = vmax.f32 %v479_v23, 0.0 }
 0x221   :  { %v485_v28 = vmin.f32 %v483_v25, 6.0 }
 0x222   :  { %v486_v29 = vmin.f32 %v484_v27, 6.0 }
 0x223   :  { %v487_v31 = vpack.c.bf16 %v485_v28, %v485_v28 }
 0x224   :  { %v488_v30 = vpack.c.bf16 %v486_v29, %v486_v29 }
 0x226   :  { %521 = vmatprep.mubr.bf16.mxu0 %v488_v30 }
 0x227   :  { %522 = vmatmul.mubr.bf16.vlgmr.msra.gmra.mrb[4].mxu0 %v487_v31 }
 0x2fa   :  { %v523_v37 = vpop.f32.mrb[4].mxu0 }
 0x2fb   :  { %v524_v38 = vadd.f32 %v523_v37, %v275_v18  ;;  %v525_v39 = vpop.f32.mrb[5].mxu0 }
 0x2fc   :  { %v526_v40 = vadd.f32 %v525_v39, %v279_v19  ;;  %v527_v41 = vpop.f32.mrb[6].mxu0 }
 0x2fd   :  { %v530_v42 = vmax.f32 %v524_v38, 0.0  ;;  %v528_v43 = vpop.f32.mrb[7].mxu0 }
 0x2fe   :  { %v531_v44 = vmax.f32 %v526_v40, 0.0 }
 0x2ff   :  { %v532_v45 = vmin.f32 %v530_v42, 6.0 }
 0x300   :  { %v533_v46 = vmin.f32 %v531_v44, 6.0 }
 0x301   :  { %v534_v48 = vpack.c.bf16 %v532_v45, %v532_v45 }
 0x302   :  { %v535_v47 = vpack.c.bf16 %v533_v46, %v533_v46 }
 0x304   :  { %703 = vmatprep.mubr.bf16.mxu1 %v535_v47 }
 0x305   :  { %704 = vmatmul.mubr.bf16.vlgmr.msra.gmra.mrb[4].mxu1 %v534_v48 }
 0x3d8   :  { %v810_v49 = vpop.f32.mrb[4].mxu1 }
 0x3d9   :  { %v811_v51 = vpop.f32.mrb[5].mxu1 }
 0x3da   :  { %v812_v52 = vadd.f32 %v811_v51, %v810_v49  ;;  %v813_v53 = vpop.f32.mrb[6].mxu1 }
 0x3db   :  { %v814_v54 = vpop.f32.mrb[7].mxu1 }
 0x3dc   :  { %v706_v55 = vadd.f32 %v812_v52, %v777_v50 }
 0x3de   :  { %711 = vst [vmem:[#allocation10] sm:$0xff] %v706_v55 }
 0x3df   :  { %1013 = shalt.err (!%p1010_p8)
}
 0x3e0   :  { %s1014_s6 = scalar_lea.hbm %s1164_s7, 128 }
 0x3e1   :  { %p1015_p9 = scmp.ne.s32.totalorder %s1164_s7, %s1014_s6  ;;  %p1018_p10 = scmp.lt.u32.totalorder %s1014_s6, %s1164_s7 }
 0x3e3   :  { %p1020_p11 = pnand %p1018_p10, %p1015_p9 }
 0x3e5   :  { %1023 = shalt.err (!%p1020_p11)
}
 0x3e6   :  { %721 = dma.vmem_to_hbm [thread:$0]  %s719_s30, 128, %s1164_s7, [#allocation4]  }
 0x3e7   :  { %1030 = dma.done.wait [#allocation4], 128  }
 0x3e8   :  { %1031 = vsyncadd [#allocation4], 4294967168 }
 0x3e9   :  { %725 = vsyncpa [#allocation3], 1 }
 0x3ea   :  { %726 = vsyncpa [#allocation6], 1 }
 0x3eb   :  { %727 = vsyncpa [#allocation9], 1 }
 0x3ec   :  { %728 = vsyncpa [#allocation4], 1 }

</bundles_post_ra>
